<compile_context>
chip_gen: v7x
topology: tpu7x:2x2x1
jax: 0.10.0
libtpu: 0.0.40
codegen_flags: <defaults>
</compile_context>

<pallas_src>
import functools

import jax
import jax.numpy as jnp
from jax.experimental import pallas as pl
from jax.experimental.pallas import tpu as pltpu


# ---------------------------------------------------------------------------
# Tiling helpers
# ---------------------------------------------------------------------------
_LANE = 128
_MIB = 1024 * 1024
_DEFAULT_BLOCK_BYTES = 4 * _MIB   # ~4 MiB blocks amortize the ~0.35us grid
                                  # step overhead on v5e/v6e/v7x
_MIN_TOTAL_GRID_STEPS = 8         # keep v7x's 2 TCs fed + give the pipeline
                                  # something to overlap


def _cdiv(a, b):
    return -(-a // b)


def _round_up(x, m):
    return _cdiv(x, m) * m


def _round_down(x, m):
    return (x // m) * m


def _sublane_pack(dtype):
    # Native VMEM tiling second-minor granule: 8 (4-byte), 16 (2-byte), 32 (1-byte).
    return max(8, 32 // jnp.dtype(dtype).itemsize)


def _pick_tile(total, granule, bytes_per_unit, max_block_bytes=_DEFAULT_BLOCK_BYTES):
    """Largest `granule`-multiple tile whose block stays within the byte budget.

    `bytes_per_unit` must already account for VMEM layout padding.  If the
    axis does not divide, the grid uses cdiv and the ragged last tile is
    handled by Pallas' masked loads/stores (rows/lanes are independent here).
    """
    if total <= granule:
        return total                      # full extent (always a legal block dim)
    budget = max(granule,
                 _round_down(max_block_bytes // max(bytes_per_unit, 1), granule))
    if total <= budget:
        return total                      # single tile covers the axis
    return budget                         # granule multiple; last tile ragged


def _cap_for_grid(total, t, granule, other_steps,
                  min_total_steps=_MIN_TOTAL_GRID_STEPS):
    """Shrink tile `t` so the total grid has >= `min_total_steps` steps when
    the shape allows it (v7x shards 'parallel' axes across its 2 TensorCores;
    a length-1 grid also gives the DMA pipeline nothing to overlap)."""
    if total <= granule:
        return t
    if other_steps * _cdiv(total, t) >= min_total_steps:
        return t
    need = _cdiv(min_total_steps, max(other_steps, 1))
    capped = max(granule, _round_down(total // need, granule))
    return min(t, capped)


def _vmem_limit(block_in_bytes, block_out_bytes, block_f32_bytes):
    # 2x double-buffered input + 2x output + ~3 fp32-block temporaries.
    est = 2 * block_in_bytes + 2 * block_out_bytes + 3 * block_f32_bytes + 2 * _MIB
    return int(min(max(est, 32 * _MIB), 56 * _MIB))


# ---------------------------------------------------------------------------
# Kernels
# ---------------------------------------------------------------------------
def _sublane_norm_kernel(x_ref, w_ref, b_ref, o_ref, *, eps, inv_c):
    # x block: (1, C, T); w/b: (C, 1). Normalize over C (sublane axis).
    x = x_ref[0].astype(jnp.float32)                       # (C, T)
    w32 = w_ref[...].astype(jnp.float32)                   # (C, 1), resident
    b32 = b_ref[...].astype(jnp.float32)                   # (C, 1)

    u = jnp.sum(x, axis=0, keepdims=True) * inv_c          # (1, T)  mean over C
    d = x - u
    s = jnp.sum(d * d, axis=0, keepdims=True) * inv_c      # biased variance
    inv = jax.lax.rsqrt(s + eps)                           # EUP slot, no divide
    o_ref[0] = (w32 * (d * inv) + b32).astype(o_ref.dtype)


def _lane_norm_kernel(x_ref, w_ref, b_ref, o_ref, *, eps, inv_c):
    # x block: (T_M, C); w/b: (1, C). Normalize over C (lane axis).
    x = x_ref[...].astype(jnp.float32)                     # (T_M, C)
    w32 = w_ref[...].astype(jnp.float32)                   # (1, C)
    b32 = b_ref[...].astype(jnp.float32)                   # (1, C)

    u = jnp.sum(x, axis=-1, keepdims=True) * inv_c         # (T_M, 1)
    d = x - u
    s = jnp.sum(d * d, axis=-1, keepdims=True) * inv_c
    inv = jax.lax.rsqrt(s + eps)
    o_ref[...] = (w32 * (d * inv) + b32).astype(o_ref.dtype)


# ---------------------------------------------------------------------------
# Wrappers
# ---------------------------------------------------------------------------
def _norm_over_channel_sublanes(x3, weight, bias, eps):
    """Normalize (N, C, L) over C (sublanes), tiling L (lanes)."""
    N, C, L = x3.shape
    dt = x3.dtype
    item = jnp.dtype(dt).itemsize
    c_pad_in = _round_up(C, _sublane_pack(dt))             # padded sublanes (input dtype)
    c_pad_f32 = _round_up(C, 8)                            # padded sublanes (fp32 temps)
    bytes_per_lane = c_pad_in * item

    t_l = _pick_tile(L, _LANE, bytes_per_lane)
    t_l = _cap_for_grid(L, t_l, _LANE, other_steps=N)
    grid = (N, _cdiv(L, t_l))

    vmem_limit = _vmem_limit(block_in_bytes=t_l * bytes_per_lane,
                             block_out_bytes=t_l * bytes_per_lane,
                             block_f32_bytes=t_l * c_pad_f32 * 4)

    w2 = weight.reshape(C, 1)
    b2 = bias.reshape(C, 1)
    kernel = functools.partial(_sublane_norm_kernel, eps=eps, inv_c=1.0 / C)

    # TODO(synk): for C < 8 (fp32) the sublane axis is only partly filled;
    # folding a factor of L into sublanes would recover the remaining ~2x.
    return pl.pallas_call(
        kernel,
        out_shape=jax.ShapeDtypeStruct((N, C, L), dt),
        grid_spec=pltpu.PrefetchScalarGridSpec(
            num_scalar_prefetch=0,
            grid=grid,
            in_specs=[
                pl.BlockSpec((1, C, t_l), lambda n, j: (n, 0, j)),
                pl.BlockSpec((C, 1), lambda n, j: (0, 0)),
                pl.BlockSpec((C, 1), lambda n, j: (0, 0)),
            ],
            out_specs=pl.BlockSpec((1, C, t_l), lambda n, j: (n, 0, j)),
        ),
        compiler_params=pltpu.CompilerParams(
            dimension_semantics=("parallel", "parallel"),
            vmem_limit_bytes=vmem_limit),
    )(x3, w2, b2)


def _layer_norm_channels_first(x, weight, bias, eps):
    N, C, H, W = x.shape
    out = _norm_over_channel_sublanes(x.reshape(N, C, H * W), weight, bias, eps)
    return out.reshape(N, C, H, W)


def _layer_norm_channels_last(x, weight, bias, eps):
    N, H, W, C = x.shape
    M = N * H * W
    dt = x.dtype

    lane_occupancy = C / _round_up(C, _LANE)
    if C % _LANE != 0 and lane_occupancy < 0.25:
        # Small / non-128-multiple C: a (t_m, C) lane layout wastes
        # (1 - C/128) of every vreg and forces masked vst partial stores
        # (the largest measured store-path penalty).  Route through the
        # sublane-reduction kernel on a transposed (1, C, M) view instead;
        # the XLA transpose passes are cheaper than the ~(128/C)x inflation
        # of the direct layout for small C.
        # TODO(synk): even better would be lane-packing r = lcm(C,128)/C
        # vectors per row with a segmented (MXU) reduction, or fusing the
        # LayerNorm into the adjacent op -- both avoid the transpose passes.
        xt = jnp.transpose(x.reshape(M, C)).reshape(1, C, M)
        out = _norm_over_channel_sublanes(xt, weight, bias, eps)
        return jnp.transpose(out.reshape(C, M)).reshape(N, H, W, C)

    item = jnp.dtype(dt).itemsize
    pack = _sublane_pack(dt)
    c_pad_lane = _round_up(C, _LANE)                        # lane-padded VMEM row
    bytes_per_row = c_pad_lane * item

    t_m = _pick_tile(M, pack, bytes_per_row)
    t_m = _cap_for_grid(M, t_m, pack, other_steps=1)
    grid = (_cdiv(M, t_m),)

    vmem_limit = _vmem_limit(block_in_bytes=t_m * bytes_per_row,
                             block_out_bytes=t_m * bytes_per_row,
                             block_f32_bytes=t_m * c_pad_lane * 4)

    x2 = x.reshape(M, C)
    w2 = weight.reshape(1, C)
    b2 = bias.reshape(1, C)
    kernel = functools.partial(_lane_norm_kernel, eps=eps, inv_c=1.0 / C)

    out = pl.pallas_call(
        kernel,
        out_shape=jax.ShapeDtypeStruct((M, C), dt),
        grid_spec=pltpu.PrefetchScalarGridSpec(
            num_scalar_prefetch=0,
            grid=grid,
            in_specs=[
                pl.BlockSpec((t_m, C), lambda i: (i, 0)),
                pl.BlockSpec((1, C), lambda i: (0, 0)),
                pl.BlockSpec((1, C), lambda i: (0, 0)),
            ],
            out_specs=pl.BlockSpec((t_m, C), lambda i: (i, 0)),
        ),
        compiler_params=pltpu.CompilerParams(
            dimension_semantics=("parallel",),
            vmem_limit_bytes=vmem_limit),
    )(x2, w2, b2)
    return out.reshape(N, H, W, C)


def layer_norm_pallas(x, weight, bias, *, eps=1e-6, data_format="channels_first"):
    """LayerNorm over the channel dimension.

    channels_first: x is (N, C, H, W), weight/bias are (C,).
    channels_last:  x is (N, H, W, C), weight/bias are (C,).
    """
    if data_format not in ("channels_last", "channels_first"):
        raise NotImplementedError
    if data_format == "channels_first":
        return _layer_norm_channels_first(x, weight, bias, eps)
    return _layer_norm_channels_last(x, weight, bias, eps)


# ---------------------------------------------------------------------------
# References (pure JAX)
# ---------------------------------------------------------------------------
def _reference_cf(x, weight, bias, eps=1e-6):
    u = jnp.mean(x, axis=1, keepdims=True)
    s = jnp.mean((x - u) ** 2, axis=1, keepdims=True)
    y = (x - u) / jnp.sqrt(s + eps)
    return weight[None, :, None, None] * y + bias[None, :, None, None]


def _reference_cl(x, weight, bias, eps=1e-6):
    u = jnp.mean(x, axis=-1, keepdims=True)
    s = jnp.mean((x - u) ** 2, axis=-1, keepdims=True)
    y = (x - u) / jnp.sqrt(s + eps)
    return weight[None, None, None, :] * y + bias[None, None, None, :]


if __name__ == "__main__":
    key = jax.random.PRNGKey(0)
    N, C, H, W = 2, 4, 16, 16

    x = jax.random.normal(key, (N, C, H, W), dtype=jnp.float32)
    # Deterministic "trained-ish" params (module init is ones/zeros; perturb
    # deterministically so weight/bias actually matter in the check).
    weight = jnp.ones((C,), dtype=jnp.float32) + 0.1 * jnp.arange(C, dtype=jnp.float32)
    bias = 0.05 * jnp.arange(C, dtype=jnp.float32)

    # channels_first path (sublane-reduction kernel)
    y_cf = layer_norm_pallas(x, weight, bias, eps=1e-6, data_format="channels_first")
    y_cf = jax.block_until_ready(y_cf)
    y_cf_ref = _reference_cf(x, weight, bias, eps=1e-6)
    assert y_cf.shape == (N, C, H, W)
    assert jnp.allclose(y_cf, y_cf_ref, atol=1e-5, rtol=1e-5), "channels_first mismatch"

    # channels_last path, small C (routed through the sublane kernel)
    x_cl = jnp.transpose(x, (0, 2, 3, 1))
    y_cl = layer_norm_pallas(x_cl, weight, bias, eps=1e-6, data_format="channels_last")
    y_cl = jax.block_until_ready(y_cl)
    y_cl_ref = _reference_cl(x_cl, weight, bias, eps=1e-6)
    assert y_cl.shape == (N, H, W, C)
    assert jnp.allclose(y_cl, y_cl_ref, atol=1e-5, rtol=1e-5), "channels_last mismatch"

    # channels_last path, C == 128 (direct lane-dense kernel)
    C2 = 128
    x_cl2 = jax.random.normal(jax.random.PRNGKey(1), (2, 8, 8, C2), dtype=jnp.float32)
    w2 = jnp.ones((C2,), dtype=jnp.float32) + 0.01 * jnp.arange(C2, dtype=jnp.float32)
    b2 = 0.02 * jnp.arange(C2, dtype=jnp.float32)
    y_cl2 = layer_norm_pallas(x_cl2, w2, b2, eps=1e-6, data_format="channels_last")
    y_cl2 = jax.block_until_ready(y_cl2)
    y_cl2_ref = _reference_cl(x_cl2, w2, b2, eps=1e-6)
    assert jnp.allclose(y_cl2, y_cl2_ref, atol=1e-5, rtol=1e-5), "channels_last(128) mismatch"

    print("KERNEL_OK")
</pallas_src>

<mosaic_0001>
module attributes {stable_mosaic.version = 11 : i64} {
  func.func @_sublane_norm_kernel(%arg0: i32, %arg1: i32, %arg2: memref<1x4x128xf32, #tpu.memory_space<vmem>>, %arg3: memref<4x1xf32, #tpu.memory_space<vmem>>, %arg4: memref<4x1xf32, #tpu.memory_space<vmem>>, %arg5: memref<1x4x128xf32, #tpu.memory_space<vmem>>) attributes {dimension_semantics = [#tpu.dimension_semantics<parallel>, #tpu.dimension_semantics<parallel>], iteration_bounds = array<i64: 2, 2>, scalar_prefetch = 0 : i64, scratch_operands = 0 : i64, tpu.core_type = #tpu.core_type<tc>, window_params = [{transform_indices = @transform_0, window_bounds = array<i64: 1, 4, 128>}, {pipeline_mode = #tpu.pipeline_mode<synchronous>, transform_indices = @transform_1, window_bounds = array<i64: 4, 1>}, {pipeline_mode = #tpu.pipeline_mode<synchronous>, transform_indices = @transform_2, window_bounds = array<i64: 4, 1>}, {transform_indices = @transform_3, window_bounds = array<i64: 1, 4, 128>}]} {
    %c0 = arith.constant 0 : index
    %c0_0 = arith.constant 0 : index
    %c0_1 = arith.constant 0 : index
    %0 = vector.load %arg2[%c0, %c0_0, %c0_1] : memref<1x4x128xf32, #tpu.memory_space<vmem>>, vector<1x4x128xf32>
    %1 = vector.shape_cast %0 : vector<1x4x128xf32> to vector<4x128xf32>
    %c0_2 = arith.constant 0 : index
    %c0_3 = arith.constant 0 : index
    %2 = vector.load %arg3[%c0_2, %c0_3] : memref<4x1xf32, #tpu.memory_space<vmem>>, vector<4x1xf32>
    %c0_4 = arith.constant 0 : index
    %c0_5 = arith.constant 0 : index
    %3 = vector.load %arg4[%c0_4, %c0_5] : memref<4x1xf32, #tpu.memory_space<vmem>>, vector<4x1xf32>
    %cst = arith.constant dense<0.000000e+00> : vector<128xf32>
    %4 = vector.multi_reduction <add>, %1, %cst [0] : vector<4x128xf32> to vector<128xf32>
    %5 = vector.shape_cast %4 : vector<128xf32> to vector<1x128xf32>
    %cst_6 = arith.constant 2.500000e-01 : f32
    %6 = vector.broadcast %cst_6 : f32 to vector<1x128xf32>
    %7 = arith.mulf %5, %6 : vector<1x128xf32>
    %8 = vector.broadcast %7 : vector<1x128xf32> to vector<4x128xf32>
    %9 = arith.subf %1, %8 : vector<4x128xf32>
    %10 = arith.mulf %9, %9 : vector<4x128xf32>
    %cst_7 = arith.constant dense<0.000000e+00> : vector<128xf32>
    %11 = vector.multi_reduction <add>, %10, %cst_7 [0] : vector<4x128xf32> to vector<128xf32>
    %12 = vector.shape_cast %11 : vector<128xf32> to vector<1x128xf32>
    %cst_8 = arith.constant 2.500000e-01 : f32
    %13 = vector.broadcast %cst_8 : f32 to vector<1x128xf32>
    %14 = arith.mulf %12, %13 : vector<1x128xf32>
    %cst_9 = arith.constant 9.99999997E-7 : f32
    %15 = vector.broadcast %cst_9 : f32 to vector<1x128xf32>
    %16 = arith.addf %14, %15 : vector<1x128xf32>
    %17 = math.rsqrt %16 : vector<1x128xf32>
    %18 = vector.broadcast %17 : vector<1x128xf32> to vector<4x128xf32>
    %19 = arith.mulf %9, %18 : vector<4x128xf32>
    %20 = vector.broadcast %2 : vector<4x1xf32> to vector<4x128xf32>
    %21 = arith.mulf %20, %19 : vector<4x128xf32>
    %22 = vector.broadcast %3 : vector<4x1xf32> to vector<4x128xf32>
    %23 = arith.addf %21, %22 : vector<4x128xf32>
    %c0_10 = arith.constant 0 : index
    %c0_11 = arith.constant 0 : index
    %c0_12 = arith.constant 0 : index
    %24 = vector.load %arg5[%c0_10, %c0_11, %c0_12] : memref<1x4x128xf32, #tpu.memory_space<vmem>>, vector<1x4x128xf32>
    %25 = vector.shape_cast %24 : vector<1x4x128xf32> to vector<4x128xf32>
    %26 = vector.shape_cast %23 : vector<4x128xf32> to vector<1x4x128xf32>
    tpu.vector_store %arg5[%c0_10, %c0_11, %c0_12], %26 {strides = array<i32>} : memref<1x4x128xf32, #tpu.memory_space<vmem>>, vector<1x4x128xf32>,
    return
  }
  func.func @transform_0(%arg0: i32, %arg1: i32) -> (i32, i32, i32) {
    %c0_i32 = arith.constant 0 : i32
    %c0_i32_0 = arith.constant 0 : i32
    return %arg0, %c0_i32, %arg1 : i32, i32, i32
  }
  func.func @transform_1(%arg0: i32, %arg1: i32) -> (i32, i32) {
    %c0_i32 = arith.constant 0 : i32
    %c0_i32_0 = arith.constant 0 : i32
    %c0_i32_1 = arith.constant 0 : i32
    return %c0_i32, %c0_i32_0 : i32, i32
  }
  func.func @transform_2(%arg0: i32, %arg1: i32) -> (i32, i32) {
    %c0_i32 = arith.constant 0 : i32
    %c0_i32_0 = arith.constant 0 : i32
    %c0_i32_1 = arith.constant 0 : i32
    return %c0_i32, %c0_i32_0 : i32, i32
  }
  func.func @transform_3(%arg0: i32, %arg1: i32) -> (i32, i32, i32) {
    %c0_i32 = arith.constant 0 : i32
    %c0_i32_0 = arith.constant 0 : i32
    return %arg0, %c0_i32, %arg1 : i32, i32, i32
  }
}

</mosaic_0001>

<bundles_post_ra>
// kernel: tpu_custom_call.1
= control target key start
LH: loop header
LB: loop body
LE: loop exit
PB: predicated region body
PF: predicated region fallthrough
CT: control target
= control target key end

     0   :  { %8 = vsyncpa [#allocation3], 0  ;;  %s797_s0 = inlined_call_operand.hbm [shape: f32[2,4,256], index: 0, kind: input, shape index: {}]   ;;  %s798_s1 = inlined_call_operand.vmem [shape: f32[4,1], index: 1, kind: input, shape index: {}]   ;;  %s799_s2 = inlined_call_operand.vmem [shape: f32[4,1], index: 2, kind: input, shape index: {}]   ;;  %s800_s3 = inlined_call_operand.hbm [shape: f32[2,4,256], index: 3, kind: output, shape index: {}]  }
   0x1   :  { %10 = vsyncpa [#allocation3 + $0x1], 0 }
   0x2   :  { %11 = vsyncpa [#allocation4], 0 }
   0x3   :  { %13 = vsyncpa [#allocation4 + $0x1], 0  ;;  %s593_s12 = smov 0   ;;  %s595_s13 = smov 0  }
   0x4   :  { %s597_s14 = smov 0   ;;  %s599_s15 = smov 0  }
   0x5   :  { %s601_s16 = smov 0   ;;  %s603_s17 = smov 0  }
   0x6   :  { %s605_s18 = smov 0   ;;  %s607_s19 = smov 0  }
   0x7 LB: > { %s343_s20 = sadd.s32 4294967295, %s568_s19   ;;  %s344_s21 = sadd.s32 4294967294, %s568_s19   ;;  %s568_s19 = sphi %s607_s19, %s19_s19   ;;  %s564_s18 = sphi %s605_s18, %s817_s18   ;;  %s560_s17 = sphi %s603_s17, %s816_s17   ;;  %s556_s16 = sphi %s601_s16, %s815_s16   ;;  %s552_s15 = sphi %s599_s15, %s814_s15   ;;  %s548_s14 = sphi %s597_s14, %s813_s14   ;;  %s544_s13 = sphi %s595_s13, %s812_s13   ;;  %s540_s12 = sphi %s593_s12, %s811_s12  }
   0x8   : > { %s28_s22 = sadd.s32 1, %s560_s17  ;;  %s31_s23 = sadd.s32 1, %s564_s18 }
   0x9   : > { %p29_p0 = scmp.ge.s32.totalorder %s28_s22, 2  ;;  %s40_s24 = sadd.s32 1, %s548_s14 }
   0xa   : > { %p47_p1 = scmp.ne.s32.totalorder %s548_s14, %s544_s13  ;;  %p48_p2 = scmp.eq.s32.totalorder %s568_s19, 0 }
   0xb   : > { %s819_s22 = smov (%p29_p0, %s28_s22), 0  ;;  %s821_s23 = smov (!%p29_p0, %s31_s23), %s564_s18 }
   0xc   : > { %s36_s25 = ssub.s32 %s560_s17, %s819_s22  ;;  %p646_p3 = por %p48_p2, %p47_p1 }
   0xd   : > { %p33_p4 = scmp.ge.s32.totalorder %s821_s23, 2  ;;  %p53_p5 = scmp.ne.s32.totalorder %s544_s13, %s540_s12 }
   0xe   : > { %p54_p6 = scmp.eq.s32.totalorder %s343_s20, 0  ;;  %p121_p7 = scmp.eq.s32.totalorder %s343_s20, 3 }
   0xf   : > { %s823_s23 = smov (%p33_p4, %s821_s23), 0  ;;  %p127_p10 = scmp.eq.s32.totalorder %s344_s21, 3 }
  0x10   : > { %p654_p8 = por %p54_p6, %p53_p5  ;;  %p658_p9 = por %p121_p7, %p47_p1 }
  0x11   : > { %s35_s29 = ssub.s32 %s564_s18, %s823_s23  ;;  %p664_p12 = por %p127_p10, %p53_p5 }
  0x12   : > { %s804_s28 = scalar_select %p658_p9, 1, 0 }
  0x13   : > { %s37_s30 = sor.u32 %s36_s25, %s35_s29  ;;  %p370_p13 = scmp.lt.s32.totalorder %s568_s19, 4 }
  0x14   : > { %p38_p11 = scmp.eq.s32.totalorder %s37_s30, 0  ;;  %s153_s5 = sand.u32 1, %s548_s14  }
  0x15   : > { %s805_s4 = scalar_select %p664_p12, 1, 0 }
  0x16   : > { %s671_s6 = scalar_select %p38_p11, %s548_s14, %s40_s24  }
  0x17   : > { %s347_s7 = sshll.u32 %s153_s5, 2  ;;  %s348_s8 = sshll.u32 %s564_s18, 1 }
  0x18   : > { %s162_s9 = sadd.s32 %s560_s17, %s348_s8  ;;  %s157_s10 = scalar_lea.vmem [#allocation2], %s347_s7 }
  0x19   : > { %s166_s11 = sshll.u32 %s157_s10, 4  ;;  %s349_s20 = sshll.u32 %s162_s9, 6  ;;  %s675_s11 = int_to_ptr.vmem [resolvable:$true] %s166_s11 }
  0x1a   : > { %s680_s29 = scalar_lea.hbm %s797_s0, %s349_s20  ;;  %p684_p0 = pnand %p370_p13, %p646_p3 }
  0x1b   : > { %s154_s30 = scalar_lea.sflag [#allocation3], %s153_s5  ;;  %s440_s7 = scalar_lea.hbm %s680_s29, 64 }
  0x1c   : > { %p441_p4 = scmp.ne.s32.totalorder %s680_s29, %s440_s7  ;;  %p442_p5 = pneg %p684_p0 }
  0x1d   : > { %s445_s9 = scalar_lea.hbm %s797_s0, 256  ;;  %p446_p3 = scmp.lt.u32.totalorder %s680_s29, %s797_s0 }
  0x1e   : > { %p443_p6 = pnand %p442_p5, %p441_p4  ;;  %p447_p10 = scmp.lt.u32.totalorder %s445_s9, %s440_s7 }
  0x1f   : > { %p449_p13 = scmp.lt.u32.totalorder %s440_s7, %s680_s29 }
  0x20   : > { %p444_p7 = pneg %p443_p6  ;;  %p448_p11 = por %p447_p10, %p446_p3 }
  0x22   : > { %p450_p1 = por %p449_p13, %p448_p11 }
  0x24   : > { %p451_p2 = pnand %p450_p1, %p444_p7 }
  0x26   : > { %454 = shalt.err (!%p451_p2)
}
  0x27   : > { %s455_s5 = scalar_lea.vmem %s675_s11, 64  ;;  %s570_s21 = smov [#allocation2]  }
  0x28   : > { %p456_p4 = scmp.ne.s32.totalorder %s675_s11, %s455_s5  ;;  %s460_s25 = sshll.u32 %s570_s21, 4  ;;  %s461_s25 = int_to_ptr.vmem [resolvable:$false] %s460_s25 }
  0x29   : > { %s462_s26 = scalar_lea.vmem %s461_s25, 128  ;;  %p463_p9 = scmp.lt.s32.totalorder %s675_s11, %s461_s25 }
  0x2a   : > { %p458_p6 = pnand %p456_p4, %p442_p5  ;;  %p464_p3 = scmp.lt.s32.totalorder %s462_s26, %s455_s5 }
  0x2c   : > { %p459_p12 = pneg %p458_p6  ;;  %p465_p10 = por %p464_p3, %p463_p9 }
  0x2e   : > { %p466_p11 = pnand %p465_p10, %p459_p12 }
  0x30   : > { %469 = shalt.err (!%p466_p11)
}
  0x31   : > { %365 = dma.hbm_to_vmem [thread:$0]  (!%p684_p0), %s680_s29, 64, %s675_s11, %s154_s30  }
  0x32   : > { %p807_p1 = scmp.lt.s32.totalorder %s568_s19, 5  ;;  %p808_p2 = scmp.ge.s32.totalorder %s568_s19, 1 }
  0x34   : > { %p172_p5 = pnand %p808_p2, %p807_p1 }
  0x35   : > { %s720_s7 = sand.u32 (!%p172_p5), 1, %s544_s13  }
  0x36   : > { %175 = sbr.rel (%p172_p5) target bundleno = 212 (0xd4), region = 32  ;;  %s351_s8 = sshll.u32 (!%p172_p5), %s720_s7, 2 }
  0x37   : > { %s178_s9 = scalar_lea.sflag (!%p172_p5), [#allocation3], %s720_s7  ;;  %s181_s24 = scalar_lea.vmem (!%p172_p5), [#allocation2], %s351_s8 }
  0x3d   : > { %531 = dma.done.wait (%p654_p8), %s178_s9, 64  }
  0x3e   : > { %533 = vsyncadd (%p654_p8), %s178_s9, 4294967232  ;;  %v571_v0 = vmov 0   ;;  %v205_v1 = vld [vmem:[%s798_s1] sm:$0xf]  ;;  %vm207_vm0 = vcmask 1043456   ;;  %s354_s27 = sshll.u32 %s556_s16, 1 }
  0x3f   : > { %437 = vset.pattern.permute.xlu0 %v571_v0  ;;  %v206_v2 = vld [vmem:[%s799_s2] sm:$0xf]  ;;  %s254_s20 = sadd.s32 %s552_s15, %s354_s27  ;;  %s203_s21 = scalar_lea.vmem [#allocation5], %s351_s8 }
  0x40   : > { %231 = vperm.xlu0 %437, %v205_v1   ;;  %v204_v3 = vld [vmem:[%s181_s24] sm:$0xf]  ;;  %s355_s5 = sshll.u32 %s254_s20, 6  ;;  %s258_s25 = sshll.u32 %s203_s21, 4  ;;  %s745_s25 = int_to_ptr.vmem [resolvable:$true] %s258_s25 }
  0x41   : > { %v208_v4 = vsel %vm207_vm0, %v204_v3, 0.0  ;;  %s743_s24 = scalar_lea.hbm %s800_s3, %s355_s5  ;;  %s243_s15 = scalar_lea.sflag [#allocation4], %s720_s7 }
  0x42   : > { %v209_v5 = vrot.slane %v208_v4, 4  ;;  %s470_s16 = scalar_lea.vmem %s745_s25, 64  ;;  %p809_p9 = scmp.ne.s32.totalorder %s804_s28, 0 }
  0x43   : > { %p471_p8 = scmp.ne.s32.totalorder %s745_s25, %s470_s16  ;;  %s572_s8 = smov [#allocation5]  }
  0x44   : > { %237 = vperm.xlu0 %437, %v206_v2   ;;  %v210_v6 = vadd.f32 %v209_v5, %v208_v4  ;;  %s474_s11 = sshll.u32 %s572_s8, 4  ;;  %s475_s11 = int_to_ptr.vmem [resolvable:$false] %s474_s11 }
  0x45   : > { %p472_p12 = pnand %p471_p8, %p809_p9  ;;  %s476_s29 = scalar_lea.vmem %s475_s11, 128 }
  0x46   : > { %v211_v7 = vrot.slane %v210_v6, 2  ;;  %p477_p7 = scmp.lt.s32.totalorder %s745_s25, %s475_s11  ;;  %p478_p13 = scmp.lt.s32.totalorder %s476_s29, %s470_s16 }
  0x47   : > { %p473_p0 = pneg %p472_p12 }
  0x48   : > { %v212_v8 = vadd.f32 %v211_v7, %v210_v6  ;;  %p479_p4 = por %p478_p13, %p477_p7 }
  0x4a   : > { %v213_v9 = vrot.slane %v212_v8, 1  ;;  %p480_p6 = pnand %p479_p4, %p473_p0 }
  0x4c   : > { %v214_v10 = vadd.f32 %v213_v9, %v212_v8 }
  0x4e   : > { %v215_v11 = vmul.f32 0.25, %v214_v10 }
  0x50   : > { %v216_v12 = vsub.f32 %v204_v3, %v215_v11 }
  0x52   : > { %v217_v13 = vmul.f32 %v216_v12, %v216_v12 }
  0x54   : > { %v218_v14 = vsel %vm207_vm0, %v217_v13, 0.0 }
  0x55   : > { %v219_v15 = vrot.slane %v218_v14, 4 }
  0x57   : > { %v220_v16 = vadd.f32 %v219_v15, %v218_v14 }
  0x59   : > { %v221_v17 = vrot.slane %v220_v16, 2 }
  0x5b   : > { %v222_v18 = vadd.f32 %v221_v17, %v220_v16 }
  0x5d   : > { %v223_v19 = vrot.slane %v222_v18, 1 }
  0x5f   : > { %v224_v20 = vadd.f32 %v223_v19, %v222_v18 }
  0x61   : > { %v225_v21 = vmul.f32 0.25, %v224_v20 }
  0x63   : > { %v226_v22 = vadd.f32 1e-06, %v225_v21 }
  0x65   : > { %438 = vrsqrt.f32 %v226_v22 }
  0x6f   : > { %v439_v23 = vpop.eup %438 }
  0x70   : > { %v228_v24 = vmul.f32 %v439_v23, %v216_v12 }
  0xbf   : > { %v232_v25 = vpop.permute.xlu0 %231 }
  0xc0   : > { %v234_v26 = vmul.f32 %v232_v25, %v228_v24 }
  0xc3   : > { %v238_v27 = vpop.permute.xlu0 %237 }
  0xc4   : > { %v240_v28 = vadd.f32 %v238_v27, %v234_v26 }
  0xc6   : > { %241 = vst [vmem:[%s203_s21] sm:$0xf] %v240_v28 }
  0xc7   : > { %483 = shalt.err (!%p480_p6)
}
  0xc8   : > { %s484_s7 = scalar_lea.hbm %s743_s24, 64  ;;  %s488_s27 = scalar_lea.hbm %s800_s3, 256 }
  0xc9   : > { %p485_p3 = scmp.ne.s32.totalorder %s743_s24, %s484_s7  ;;  %p489_p1 = scmp.lt.u32.totalorder %s743_s24, %s800_s3 }
  0xca   : > { %p490_p2 = scmp.lt.u32.totalorder %s488_s27, %s484_s7  ;;  %p492_p8 = scmp.lt.u32.totalorder %s484_s7, %s743_s24 }
  0xcb   : > { %p486_p10 = pnand %p485_p3, %p809_p9 }
  0xcc   : > { %p491_p5 = por %p490_p2, %p489_p1 }
  0xcd   : > { %p487_p11 = pneg %p486_p10 }
  0xce   : > { %p493_p12 = por %p492_p8, %p491_p5 }
  0xd0   : > { %p494_p0 = pnand %p493_p12, %p487_p11 }
  0xd2   : > { %497 = shalt.err (!%p494_p0)
}
  0xd3   : > { %360 = dma.vmem_to_hbm [thread:$0]  (%p809_p9), %s745_s25, 64, %s743_s24, %s243_s15  }
  0xd4 PF: > { %p371_p7 = scmp.ge.s32.totalorder %s568_s19, 2  ;;  %s270_s21 = sand.u32 1, %s540_s12  }
  0xd5   : > { %p810_p13 = scmp.ne.s32.totalorder %s805_s4, 0  ;;  %s271_s26 = scalar_lea.sflag [#allocation4], %s270_s21 }
  0xd7   : > { %p367_p4 = pnand %p371_p7, %p810_p13 }
  0xd9   : > { %535 = dma.done.wait (!%p367_p4), %s271_s26, 64  }
  0xda   : > { %537 = vsyncadd (!%p367_p4), %s271_s26, 4294967232  ;;  %s19_s19 = sadd.s32 1, %s568_s19   ;;  %s811_s12 = smov %s544_s13 }
  0xdb   : > { %p16_p6 = scmp.ge.s32.totalorder %s19_s19, 6   ;;  %s812_s13 = smov %s548_s14 }
  0xdc   : > { %s813_s14 = smov %s671_s6  ;;  %s814_s15 = smov %s560_s17 }
  0xdd   : > { %s815_s16 = smov %s564_s18  ;;  %s816_s17 = smov %s819_s22 }
  0xde   : > { %s817_s18 = smov %s823_s23  ;;  %18 = sbr.rel (!%p16_p6) target bundleno = 7 (0x7), region = 77 }
  0xe5   :  { %276 = vsyncpa [#allocation3], 1 }
  0xe6   :  { %278 = vsyncpa [#allocation3 + $0x1], 1 }
  0xe7   :  { %279 = vsyncpa [#allocation4], 1 }
  0xe8   :  { %281 = vsyncpa [#allocation4 + $0x1], 1 }

</bundles_post_ra>
